<compile_context>
chip_gen: v7x
topology: tpu7x:2x2x1
jax: 0.10.0
libtpu: 0.0.40
codegen_flags: <defaults>
</compile_context>

<pallas_src>
import functools

import jax
import jax.numpy as jnp
from jax.experimental import pallas as pl
from jax.experimental.pallas import tpu as pltpu

SUBLANE = 8      # f32 sublane count
MAX_TB = 512     # batch tile cap (rows)


def _round_up(n, m):
    return pl.cdiv(n, m) * m


def _rf_kernel(x_ref, w1_ref, b1_ref, w2_ref, b2_ref, *out_refs,
               want_y, want_pred):
    mm_dtype = w1_ref.dtype  # matmul (MXU) input dtype, e.g. bfloat16

    # Hidden layer: tanh(x @ W1 + b1)   (MXU matmul, f32 accum, EUP tanh)
    x = x_ref[...].astype(mm_dtype)
    h = jnp.tanh(
        jnp.dot(x, w1_ref[...], preferred_element_type=jnp.float32)
        + b1_ref[...]
    )
    # Output layer: h @ W2 + b2
    y = (
        jnp.dot(h.astype(mm_dtype), w2_ref[...],
                preferred_element_type=jnp.float32)
        + b2_ref[...]
    )

    i = 0
    if want_y:
        out_refs[i][...] = y.astype(out_refs[i].dtype)
        i += 1
    if want_pred:
        # Fused argmax over output lanes (first-max tie-break, matching
        # jnp.argmax / torch.argmax). NaN rows are not specially handled.
        lane = jax.lax.broadcasted_iota(jnp.int32, y.shape, 1)
        max_v = jnp.max(y, axis=1, keepdims=True)
        cand = jnp.where(y == max_v, lane, jnp.int32(y.shape[1]))
        out_refs[i][...] = jnp.min(cand, axis=1, keepdims=True).astype(jnp.int32)


def _rf_impl(x, w1, b1, w2, b2, *, want_y, want_pred, matmul_dtype):
    """Builds and calls the fused pallas_call.

    x  : (B, input_size)        f32
    w1 : (input_size, hidden)   f32   (transposed vs. PyTorch)
    b1 : (1, hidden) or (hidden,)
    w2 : (hidden, output)       f32   (transposed vs. PyTorch)
    b2 : (1, output) or (output,)
    """
    B, in_size = x.shape
    hidden = w1.shape[1]
    out_size = w2.shape[1]

    # Pre-cast resident weights once (tiny); biases stay f32 for the f32 add.
    w1_m = w1.astype(matmul_dtype)
    w2_m = w2.astype(matmul_dtype)
    b1_f = jnp.asarray(b1, jnp.float32).reshape(1, hidden)
    b2_f = jnp.asarray(b2, jnp.float32).reshape(1, out_size)

    # Batch tile: big tiles amortize per-step overhead / feed the MXU, but for
    # large B keep >= 2 grid steps so the "parallel" axis can use both v7x TCs.
    if B <= 256:
        tb = B                                        # single step, full dim
    elif B <= 2 * MAX_TB:
        tb = _round_up(pl.cdiv(B, 2), SUBLANE)        # exactly 2 steps
    else:
        tb = MAX_TB
    grid = (pl.cdiv(B, tb),)

    out_shape = []
    out_specs = []
    if want_y:
        out_shape.append(jax.ShapeDtypeStruct((B, out_size), jnp.float32))
        out_specs.append(pl.BlockSpec((tb, out_size), lambda i: (i, 0)))
    if want_pred:
        out_shape.append(jax.ShapeDtypeStruct((B, 1), jnp.int32))
        out_specs.append(pl.BlockSpec((tb, 1), lambda i: (i, 0)))

    # VMEM budget: double-buffered x/y/pred tiles + resident weights/biases
    # + in-kernel f32 temporaries, with headroom; never below the 32 MiB
    # default, never above v7x's 64 MiB physical VMEM.
    mm_bytes = jnp.dtype(matmul_dtype).itemsize
    est = (2 * tb * in_size * 4
           + (2 * tb * out_size * 4 if want_y else 0)
           + (2 * tb * 4 if want_pred else 0)
           + 2 * (in_size * hidden + hidden * out_size) * mm_bytes
           + 2 * (hidden + out_size) * 4
           + 4 * tb * max(hidden, out_size) * 4)
    vmem_limit = int(min(64 << 20, max(32 << 20, 2 * est)))

    kernel = functools.partial(_rf_kernel, want_y=want_y, want_pred=want_pred)

    # TODO(synk): for very large hidden/input sizes, consider
    # pipeline_mode=pl.Buffered(1) on the resident weight BlockSpecs to halve
    # their VMEM footprint (matters most on v7x's 64 MiB VMEM).
    outs = pl.pallas_call(
        kernel,
        out_shape=tuple(out_shape),
        grid=grid,
        in_specs=[
            pl.BlockSpec((tb, in_size), lambda i: (i, 0)),      # x tile/step
            pl.BlockSpec((in_size, hidden), lambda i: (0, 0)),  # W1 resident
            pl.BlockSpec((1, hidden), lambda i: (0, 0)),        # b1 resident
            pl.BlockSpec((hidden, out_size), lambda i: (0, 0)), # W2 resident
            pl.BlockSpec((1, out_size), lambda i: (0, 0)),      # b2 resident
        ],
        out_specs=tuple(out_specs),
        compiler_params=pltpu.CompilerParams(
            # Batch axis is independent -> shards across v7x's 2 TensorCores;
            # harmless no-op on single-TC v5e/v6e.
            dimension_semantics=("parallel",),
            vmem_limit_bytes=vmem_limit,
        ),
    )(x, w1_m, b1_f, w2_m, b2_f)

    results = []
    i = 0
    if want_y:
        results.append(outs[i])
        i += 1
    if want_pred:
        results.append(outs[i][:, 0])
        i += 1
    return tuple(results) if len(results) > 1 else results[0]


# Public entry points (bf16 MXU inputs, f32 accumulation).
rf_apply = jax.jit(functools.partial(
    _rf_impl, want_y=True, want_pred=True, matmul_dtype=jnp.bfloat16))
rf_forward = jax.jit(functools.partial(          # == RF.forward
    _rf_impl, want_y=True, want_pred=False, matmul_dtype=jnp.bfloat16))
rf_predict = jax.jit(functools.partial(          # == RF.predict (no y writeback)
    _rf_impl, want_y=False, want_pred=True, matmul_dtype=jnp.bfloat16))

# Full-f32 variant (exact PyTorch-equivalent numerics) for verification.
rf_apply_f32 = jax.jit(functools.partial(
    _rf_impl, want_y=True, want_pred=True, matmul_dtype=jnp.float32))


if __name__ == "__main__":
    # Shapes implied by the module: x (batch, input_size), hidden, output.
    batch, input_size, hidden_size, output_size = 8, 32, 32, 16

    key = jax.random.PRNGKey(0)
    kx, kw1, kb1, kw2, kb2 = jax.random.split(key, 5)

    x = jax.random.normal(kx, (batch, input_size), dtype=jnp.float32)

    # Deterministic parameter init (uniform, PyTorch-Linear-style bounds).
    bound1 = 1.0 / (input_size ** 0.5)
    w1 = jax.random.uniform(kw1, (input_size, hidden_size), jnp.float32,
                            -bound1, bound1)
    b1 = jax.random.uniform(kb1, (1, hidden_size), jnp.float32,
                            -bound1, bound1)
    bound2 = 1.0 / (hidden_size ** 0.5)
    w2 = jax.random.uniform(kw2, (hidden_size, output_size), jnp.float32,
                            -bound2, bound2)
    b2 = jax.random.uniform(kb2, (1, output_size), jnp.float32,
                            -bound2, bound2)

    # f32 path: exact check against the plain-JAX reference.
    y32, p32 = rf_apply_f32(x, w1, b1, w2, b2)
    jax.block_until_ready((y32, p32))
    y_ref = jnp.tanh(x @ w1 + b1) @ w2 + b2
    assert jnp.allclose(y32, y_ref, atol=1e-5, rtol=1e-5), "f32 y mismatch"
    assert jnp.array_equal(p32, jnp.argmax(y32, axis=1)), "f32 pred mismatch"

    # bf16-MXU path (default): loose check vs f32 ref, exact self-consistency.
    yb, pb = rf_apply(x, w1, b1, w2, b2)
    jax.block_until_ready((yb, pb))
    assert jnp.allclose(yb, y_ref, atol=5e-2, rtol=0.0), "bf16 y mismatch"
    assert jnp.array_equal(pb, jnp.argmax(yb, axis=1)), "bf16 pred mismatch"

    # Predict-only (no y HBM writeback) and forward-only paths.
    p_only = rf_predict(x, w1, b1, w2, b2)
    y_only = rf_forward(x, w1, b1, w2, b2)
    jax.block_until_ready((p_only, y_only))
    assert jnp.array_equal(p_only, pb), "predict-only path mismatch"
    assert jnp.allclose(y_only, yb, atol=1e-6, rtol=0.0), "forward path mismatch"

    print("KERNEL_OK")
</pallas_src>

<mosaic_0001>
module attributes {stable_mosaic.version = 11 : i64} {
  func.func @_rf_kernel(%arg0: i32, %arg1: memref<8x32xf32, #tpu.memory_space<vmem>>, %arg2: memref<32x32xf32, #tpu.memory_space<vmem>>, %arg3: memref<1x32xf32, #tpu.memory_space<vmem>>, %arg4: memref<32x16xf32, #tpu.memory_space<vmem>>, %arg5: memref<1x16xf32, #tpu.memory_space<vmem>>, %arg6: memref<8x16xf32, #tpu.memory_space<vmem>>, %arg7: memref<8x1xi32, #tpu.memory_space<vmem>>) attributes {dimension_semantics = [#tpu.dimension_semantics<parallel>], iteration_bounds = array<i64: 1>, scalar_prefetch = 0 : i64, scratch_operands = 0 : i64, tpu.core_type = #tpu.core_type<tc>, window_params = [{transform_indices = @transform_0, window_bounds = array<i64: 8, 32>}, {pipeline_mode = #tpu.pipeline_mode<synchronous>, transform_indices = @transform_1, window_bounds = array<i64: 32, 32>}, {pipeline_mode = #tpu.pipeline_mode<synchronous>, transform_indices = @transform_2, window_bounds = array<i64: 1, 32>}, {pipeline_mode = #tpu.pipeline_mode<synchronous>, transform_indices = @transform_3, window_bounds = array<i64: 32, 16>}, {pipeline_mode = #tpu.pipeline_mode<synchronous>, transform_indices = @transform_4, window_bounds = array<i64: 1, 16>}, {transform_indices = @transform_5, window_bounds = array<i64: 8, 16>}, {transform_indices = @transform_6, window_bounds = array<i64: 8, 1>}]} {
    %c0 = arith.constant 0 : index
    %c0_0 = arith.constant 0 : index
    %0 = vector.load %arg1[%c0, %c0_0] : memref<8x32xf32, #tpu.memory_space<vmem>>, vector<8x32xf32>
    %c0_1 = arith.constant 0 : index
    %c0_2 = arith.constant 0 : index
    %1 = vector.load %arg2[%c0_1, %c0_2] : memref<32x32xf32, #tpu.memory_space<vmem>>, vector<32x32xf32>
    %cst = arith.constant dense<0.000000e+00> : vector<8x32xf32>
    %2 = tpu.matmul %0, %1, %cst {dimension_numbers = #tpu.dot_dimension_numbers<[1], [0], [0], [1], [0, 0, 1, 1], [], []>} : vector<8x32xf32>, vector<32x32xf32>, vector<8x32xf32> -> vector<8x32xf32>
    %c0_3 = arith.constant 0 : index
    %c0_4 = arith.constant 0 : index
    %3 = vector.load %arg3[%c0_3, %c0_4] : memref<1x32xf32, #tpu.memory_space<vmem>>, vector<1x32xf32>
    %4 = vector.broadcast %3 : vector<1x32xf32> to vector<8x32xf32>
    %5 = arith.addf %2, %4 : vector<8x32xf32>
    %6 = math.tanh %5 : vector<8x32xf32>
    %c0_5 = arith.constant 0 : index
    %c0_6 = arith.constant 0 : index
    %7 = vector.load %arg4[%c0_5, %c0_6] : memref<32x16xf32, #tpu.memory_space<vmem>>, vector<32x16xf32>
    %cst_7 = arith.constant dense<0.000000e+00> : vector<8x16xf32>
    %8 = tpu.matmul %6, %7, %cst_7 {dimension_numbers = #tpu.dot_dimension_numbers<[1], [0], [0], [1], [0, 0, 1, 1], [], []>} : vector<8x32xf32>, vector<32x16xf32>, vector<8x16xf32> -> vector<8x16xf32>
    %c0_8 = arith.constant 0 : index
    %c0_9 = arith.constant 0 : index
    %9 = vector.load %arg5[%c0_8, %c0_9] : memref<1x16xf32, #tpu.memory_space<vmem>>, vector<1x16xf32>
    %10 = vector.broadcast %9 : vector<1x16xf32> to vector<8x16xf32>
    %11 = arith.addf %8, %10 : vector<8x16xf32>
    %c0_10 = arith.constant 0 : index
    %c0_11 = arith.constant 0 : index
    %12 = vector.load %arg6[%c0_10, %c0_11] : memref<8x16xf32, #tpu.memory_space<vmem>>, vector<8x16xf32>
    tpu.vector_store %arg6[%c0_10, %c0_11], %11 {strides = array<i32>} : memref<8x16xf32, #tpu.memory_space<vmem>>, vector<8x16xf32>,
    %13 = tpu.iota {dimensions = array<i32: 1>} : vector<8x16xi32>
    %cst_12 = arith.constant dense<0xFF800000> : vector<8xf32>
    %14 = vector.multi_reduction <maximumf>, %11, %cst_12 [1] : vector<8x16xf32> to vector<8xf32>
    %15 = vector.shape_cast %14 : vector<8xf32> to vector<8x1xf32>
    %16 = vector.broadcast %15 : vector<8x1xf32> to vector<8x16xf32>
    %17 = arith.cmpf oeq, %11, %16 : vector<8x16xf32>
    %c16_i32 = arith.constant 16 : i32
    %18 = vector.broadcast %c16_i32 : i32 to vector<8x16xi32>
    %19 = arith.select %17, %13, %18 : vector<8x16xi1>, vector<8x16xi32>
    %cst_13 = arith.constant dense<2147483647> : vector<8xi32>
    %20 = vector.multi_reduction <minsi>, %19, %cst_13 [1] : vector<8x16xi32> to vector<8xi32>
    %21 = vector.shape_cast %20 : vector<8xi32> to vector<8x1xi32>
    %c0_14 = arith.constant 0 : index
    %c0_15 = arith.constant 0 : index
    %22 = vector.load %arg7[%c0_14, %c0_15] : memref<8x1xi32, #tpu.memory_space<vmem>>, vector<8x1xi32>
    tpu.vector_store %arg7[%c0_14, %c0_15], %21 {strides = array<i32>} : memref<8x1xi32, #tpu.memory_space<vmem>>, vector<8x1xi32>,
    return
  }
  func.func @transform_0(%arg0: i32) -> (i32, i32) {
    %c0_i32 = arith.constant 0 : i32
    %c0_i32_0 = arith.constant 0 : i32
    return %arg0, %c0_i32 : i32, i32
  }
  func.func @transform_1(%arg0: i32) -> (i32, i32) {
    %c0_i32 = arith.constant 0 : i32
    %c0_i32_0 = arith.constant 0 : i32
    %c0_i32_1 = arith.constant 0 : i32
    return %c0_i32, %c0_i32_0 : i32, i32
  }
  func.func @transform_2(%arg0: i32) -> (i32, i32) {
    %c0_i32 = arith.constant 0 : i32
    %c0_i32_0 = arith.constant 0 : i32
    %c0_i32_1 = arith.constant 0 : i32
    return %c0_i32, %c0_i32_0 : i32, i32
  }
  func.func @transform_3(%arg0: i32) -> (i32, i32) {
    %c0_i32 = arith.constant 0 : i32
    %c0_i32_0 = arith.constant 0 : i32
    %c0_i32_1 = arith.constant 0 : i32
    return %c0_i32, %c0_i32_0 : i32, i32
  }
  func.func @transform_4(%arg0: i32) -> (i32, i32) {
    %c0_i32 = arith.constant 0 : i32
    %c0_i32_0 = arith.constant 0 : i32
    %c0_i32_1 = arith.constant 0 : i32
    return %c0_i32, %c0_i32_0 : i32, i32
  }
  func.func @transform_5(%arg0: i32) -> (i32, i32) {
    %c0_i32 = arith.constant 0 : i32
    %c0_i32_0 = arith.constant 0 : i32
    return %arg0, %c0_i32 : i32, i32
  }
  func.func @transform_6(%arg0: i32) -> (i32, i32) {
    %c0_i32 = arith.constant 0 : i32
    %c0_i32_0 = arith.constant 0 : i32
    return %arg0, %c0_i32 : i32, i32
  }
}

</mosaic_0001>

<bundles_post_ra>
// kernel: _rf_impl.1
= control target key start
LH: loop header
LB: loop body
LE: loop exit
PB: predicated region body
PF: predicated region fallthrough
CT: control target
= control target key end

     0   :  { %v316_v3 = vmov 0.0|0.0   ;;  %vm317_vm0 = vmmov 0   ;;  %v318_v6 = vmov 0.0   ;;  %s405_s0 = inlined_call_operand.vmem [shape: f32[8,32], index: 0, kind: input, shape index: {}]   ;;  %s406_s1 = inlined_call_operand.vmem [shape: f32[32,32], index: 1, kind: input, shape index: {}]   ;;  %s407_s2 = inlined_call_operand.vmem [shape: f32[1,32], index: 2, kind: input, shape index: {}]   ;;  %s408_s3 = inlined_call_operand.vmem [shape: f32[32,16], index: 3, kind: input, shape index: {}]   ;;  %s409_s4 = inlined_call_operand.vmem [shape: f32[1,16], index: 4, kind: input, shape index: {}]   ;;  %s410_s5 = inlined_call_operand.hbm [shape: f32[8,16], index: 5, kind: output, shape index: {0}]   ;;  %s411_s6 = inlined_call_operand.vmem [shape: s32[8,1], index: 6, kind: output, shape index: {1}]  }
   0x1   :  { %v24_v0 = vld [vmem:[%s406_s1] sm:$0xff]  ;;  %v25_v1 = vld [vmem:[%s406_s1 + $0x8] sm:$0xff]  ;;  %v26_v2 = vld [vmem:[%s406_s1 + $0x10] sm:$0xff]  ;;  %274 = vmatprep.subr.bf16.mxu0 %v316_v3  ;;  %260 = vmatprep.mubr.msk.f32.mxu0 %vm317_vm0, %v318_v6 }
   0x2   :  { %v275_v4 = vpack.c.bf16 %v25_v1, %v24_v0  ;;  %v27_v5 = vld [vmem:[%s406_s1 + $0x18] sm:$0xff]  ;;  %280 = vmatprep.subr.bf16.mxu1 %v316_v3  ;;  %271 = vmatprep.mubr.msk.f32.mxu1 %vm317_vm0, %v318_v6 }
   0x3   :  { %12 = vsyncpa [#allocation3], 0  ;;  %v278_v7 = vpack.c.bf16 %v27_v5, %v26_v2  ;;  %v23_v8 = vld [vmem:[%s405_s0] sm:$0xff]  ;;  %vm35_vm1 = vcmask 261120   ;;  %v111_v10 = vld [vmem:[%s408_s3 + $0x8] sm:$0xff]  ;;  %vm194_vm2 = vcmask 130048   ;;  %v196_v25 = vlaneseq }
   0x4   :  { %276 = vmatpush3.bf16.msra.mxu0 %v275_v4  ;;  %v110_v9 = vld [vmem:[%s408_s3] sm:$0xff]  ;;  %v112_v11 = vld [vmem:[%s408_s3 + $0x10] sm:$0xff]  ;;  %v113_v13 = vld [vmem:[%s408_s3 + $0x18] sm:$0xff] }
   0x5   :  { %277 = vmatprep.subr.bf16.mxu0 %v316_v3  ;;  %v281_v12 = vpack.c.bf16 %v111_v10, %v110_v9  ;;  %v284_v14 = vpack.c.bf16 %v113_v13, %v112_v11  ;;  %v238_v15 = vld [vmem:[%s407_s2] ss:$0 sm:$0xff]  ;;  %v197_v26 = vand.u32 127, %v196_v25  ;;  %s319_s2 = smov [#allocation2]  }
   0x6   :  { %v240_v20 = vld [vmem:[%s409_s4] ss:$0 sm:$0xff]  ;;  %s226_s3 = sshll.u32 %s319_s2, 4  ;;  %s227_s3 = int_to_ptr.vmem [resolvable:$true] %s226_s3 }
   0x7   :  { %282 = vmatpush3.bf16.msra.mxu1 %v281_v12  ;;  %s292_s4 = scalar_lea.vmem %s227_s3, 128  ;;  %p297_p1 = scmp.lt.s32.totalorder %s227_s3, %s227_s3 }
   0x8   :  { %279 = vmatpush3.bf16.msra.mxu0 %v278_v7  ;;  %283 = vmatprep.subr.bf16.mxu1 %v316_v3  ;;  %p293_p0 = scmp.ne.s32.totalorder %s227_s3, %s292_s4  ;;  %p298_p2 = scmp.lt.s32.totalorder %s292_s4, %s292_s4 }
   0xa   :  { %p299_p3 = por %p298_p2, %p297_p1 }
   0xb   :  { %261 = vmatmul.mubr.msk.f32.vlgmr.msra.gmra.mrb[0].mxu0 %vm35_vm1, %v23_v8  ;;  %285 = vmatpush3.bf16.msra.mxu1 %v284_v14 }
   0xc   :  { %p300_p4 = pnand %p299_p3, %p293_p0 }
  0xde   :  { %v105_v16 = vpop.f32.mrb[0].mxu0 }
  0xdf   :  { %v106_v17 = vadd.f32 %v238_v15, %v105_v16  ;;  %v262_v18 = vpop.f32.mrb[1].mxu0 }
  0xe1   :  { %290 = vtanh.f32 %v106_v17 }
  0xeb   :  { %v291_v19 = vpop.eup %290 }
  0xec   :  { %272 = vmatmul.mubr.msk.f32.vlgmr.msra.gmra.mrb[0].mxu1 %vm35_vm1, %v291_v19 }
 0x1bf   :  { %v190_v21 = vpop.f32.mrb[0].mxu1 }
 0x1c0   :  { %v191_v22 = vadd.f32 %v240_v20, %v190_v21  ;;  %v273_v23 = vpop.f32.mrb[1].mxu1 }
 0x1c2   :  { %v198_v24 = vsel %vm194_vm2, %v191_v22, -inf  ;;  %195 = vst.msk [vmem:[#allocation2] sm:$0xff] %vm194_vm2, %v191_v22 }
 0x1c3   :  { %199 = vmax.xlane.f32.xlu0 %v198_v24 }
 0x250   :  { %v200_v27 = vpop.xlane.xlu0 %199 }
 0x251   :  { %vm201_vm3 = vcmp.eq.f32.partialorder %v191_v22, %v200_v27 }
 0x252   :  { %v202_v28 = vsel %vm201_vm3, %v197_v26, 16 }
 0x253   :  { %v203_v29 = vsel %vm194_vm2, %v202_v28, 2147483647 }
 0x254   :  { %v205_v30 = vshra.s32 %v203_v29, 16  ;;  %v204_v32 = vand.u32 65535, %v203_v29 }
 0x256   :  { %v207_v31 = vcvt.s32.f32 %v205_v30  ;;  %v206_v34 = vcvt.s32.f32 %v204_v32 }
 0x258   :  { %208 = vmin.xlane.f32.xlu0 %v207_v31 }
 0x2e5   :  { %v209_v33 = vpop.xlane.xlu0 %208 }
 0x2e6   :  { %vm210_vm4 = vcmp.eq.f32.partialorder %v207_v31, %v209_v33 }
 0x2e7   :  { %v211_v35 = vsel %vm210_vm4, %v206_v34, inf }
 0x2e8   :  { %212 = vmin.xlane.f32.xlu1 %v211_v35 }
 0x2e9   :  { %303 = shalt.err (!%p300_p4)
}
 0x2ea   :  { %s304_s19 = scalar_lea.hbm %s410_s5, 128 }
 0x2eb   :  { %p305_p5 = scmp.ne.s32.totalorder %s410_s5, %s304_s19  ;;  %p308_p6 = scmp.lt.u32.totalorder %s304_s19, %s410_s5 }
 0x2ed   :  { %p310_p7 = pnand %p308_p6, %p305_p5 }
 0x2ef   :  { %313 = shalt.err (!%p310_p7)
}
 0x2f0   :  { %229 = dma.vmem_to_hbm [thread:$0]  %s227_s3, 128, %s410_s5, [#allocation3]   ;;  %v215_v36 = vcvt.f32.s32 %v209_v33  ;;  %vm218_vm5 = vcmask 7168  }
 0x2f2   :  { %v216_v38 = vshll.u32 %v215_v36, 16 }
 0x375   :  { %v213_v37 = vpop.xlane.xlu1 %212 }
 0x376   :  { %v214_v39 = vcvt.f32.s32 %v213_v37 }
 0x378   :  { %v217_v40 = vadd.s32 %v216_v38, %v214_v39 }
 0x37a   :  { %219 = vst.msk [vmem:[%s411_s6] sm:$0xff] %vm218_vm5, %v217_v40 }
 0x37b   :  { %314 = dma.done.wait [#allocation3], 128  }
 0x37c   :  { %315 = vsyncadd [#allocation3], 4294967168 }
 0x37d   :  { %237 = vsyncpa [#allocation3], 1 }

</bundles_post_ra>
